<compile_context>
chip_gen: v5e
topology: v5e:2x2
jax: 0.10.0
libtpu: 0.0.40
codegen_flags: <defaults>
</compile_context>

<pallas_src>
import functools

import jax
import jax.numpy as jnp
from jax.experimental import pallas as pl
from jax.experimental.pallas import tpu as pltpu

LANE = 128            # lane width (last-dim tile)
SUBLANE_F32 = 8       # f32 sublane tile
SUBLANE_BF16 = 16     # bf16 sublane tile


def _round_up(x, m):
    return ((x + m - 1) // m) * m


# ----------------------------- fused Pallas kernel ---------------------------

def _fused_mlp_kernel(x_ref, w_ref, b_ref, o_ref, *, n_layers, d):
    """Whole BertMLPNet head: a chain of (B,D)@(D,D) matmuls in one kernel.

    x_ref : (B, D)            f32   fused [token|feature|embedding], lane-padded
    w_ref : (n_layers*D, D)   bf16  packed weights (layer i at sublanes i*D:(i+1)*D)
    b_ref : (n_layers*8, D)   f32   packed biases (layer i at sublane 8*i)
    o_ref : (B, D)            f32   lane-dense logits slab (logits in lanes 0:4)
    """
    x = x_ref[...].astype(jnp.bfloat16)                       # (B, D)
    for i in range(n_layers):
        w = w_ref[d * i: d * (i + 1), :]                       # (D, D) bf16 view
        b = b_ref[8 * i: 8 * i + 1, :]                         # (1, D) f32
        y = jnp.dot(x, w, preferred_element_type=jnp.float32) + b   # f32 epilogue
        if i < n_layers - 1:
            x = jnp.maximum(y, 0.0).astype(jnp.bfloat16)       # ReLU, back to MXU dtype
        else:
            o_ref[...] = y.astype(o_ref.dtype)                 # fn_last: no ReLU


# --------------------------- parameter construction --------------------------

def _init_linear_f32(key, in_features, out_features):
    """torch.nn.Linear-style init U(-k, k), k = 1/sqrt(in_features)."""
    kw, kb = jax.random.split(key)
    bound = 1.0 / float(in_features) ** 0.5
    w = jax.random.uniform(kw, (in_features, out_features), jnp.float32,
                           minval=-bound, maxval=bound)
    b = jax.random.uniform(kb, (out_features,), jnp.float32,
                           minval=-bound, maxval=bound)
    return w, b


def init_bert_mlp_params(key, num_tokens, num_features, emb_size, layers):
    """Builds the packed, tile-aligned weight/bias blobs for the fused kernel."""
    layers = [layers] if isinstance(layers, int) else list(layers)
    assert layers[0] % 2 == 0, "layers[0] must be even (split into two halves)"
    half = layers[0] // 2

    widths = list(layers)
    widths[0] = layers[0] + emb_size            # width of concat([t, f, e])
    in_dim = num_tokens + num_features + emb_size

    # Logical node dims along the chain: input -> widths[0] -> ... -> 4 logits.
    node_dims = [in_dim] + widths + [4]
    n_layers = len(node_dims) - 1               # branch block + fn_layers + fn_last

    keys = jax.random.split(key, 3 + n_layers)  # a couple spare keys is fine

    # Branch linears, folded into one block-diagonal weight (the torch.cat).
    w_tok, b_tok = _init_linear_f32(keys[0], num_tokens, half)
    w_feat, b_feat = _init_linear_f32(keys[1], num_features, half)
    w_emb, b_emb = _init_linear_f32(keys[2], emb_size, emb_size)
    w_branch = jnp.zeros((in_dim, widths[0]), jnp.float32)
    w_branch = w_branch.at[:num_tokens, :half].set(w_tok)
    w_branch = w_branch.at[num_tokens:num_tokens + num_features,
                           half:2 * half].set(w_feat)
    w_branch = w_branch.at[num_tokens + num_features:, 2 * half:].set(w_emb)
    b_branch = jnp.concatenate([b_tok, b_feat, b_emb])

    # Full layer chain in forward order: branch (ReLU), fn_layers (ReLU), fn_last.
    chain = [(w_branch, b_branch)]
    for i in range(len(widths) - 1):                       # fn_layers
        chain.append(_init_linear_f32(keys[3 + i], widths[i], widths[i + 1]))
    chain.append(_init_linear_f32(keys[3 + n_layers - 1], widths[-1], 4))  # fn_last
    assert len(chain) == n_layers

    # Common padded width: every node dim rounded up to the lane tile.
    d = max(_round_up(dim, LANE) for dim in node_dims)
    assert d % SUBLANE_BF16 == 0 and d % LANE == 0

    # Packed, tile-aligned blobs. Zero filler -> padded lanes stay exactly 0.
    w_blob = jnp.zeros((n_layers * d, d), jnp.bfloat16)
    b_blob = jnp.zeros((n_layers * SUBLANE_F32, d), jnp.float32)
    for i, (w, b) in enumerate(chain):
        w_blob = w_blob.at[i * d: i * d + w.shape[0], : w.shape[1]].set(
            w.astype(jnp.bfloat16))
        b_blob = b_blob.at[SUBLANE_F32 * i, : b.shape[0]].set(b)

    return {"w_blob": w_blob, "b_blob": b_blob}


# -------------------------------- forward pass --------------------------------

def bert_mlp_forward(params, token, feature, embedding):
    """token: (B, num_tokens), feature: (B, num_features),
    embedding: (B, emb_size) == h_last[:, 0, :].  Returns logits (B, 4)."""
    w_blob, b_blob = params["w_blob"], params["b_blob"]
    d = w_blob.shape[1]
    n_layers = w_blob.shape[0] // d
    batch = token.shape[0]

    # One fused, lane-padded activation slab (1 DMA instead of 3).
    x0 = jnp.concatenate([token, feature, embedding], axis=-1).astype(jnp.float32)
    x0 = jnp.pad(x0, ((0, 0), (0, d - x0.shape[1])))

    cost = pl.CostEstimate(
        flops=2 * batch * n_layers * d * d,
        transcendentals=0,
        bytes_accessed=(x0.size * 4 + w_blob.size * 2 + b_blob.size * 4
                        + batch * d * 4),
    )

    out = pl.pallas_call(
        functools.partial(_fused_mlp_kernel, n_layers=n_layers, d=d),
        out_shape=jax.ShapeDtypeStruct((batch, d), jnp.float32),
        in_specs=[pl.BlockSpec(memory_space=pltpu.VMEM)] * 3,
        out_specs=pl.BlockSpec(memory_space=pltpu.VMEM),
        cost_estimate=cost,
    )(x0, w_blob, b_blob)

    # Slice the lane-dense (B, 128) slab down to the real logits.
    return out[:, :4]


def _reference_forward(params, token, feature, embedding):
    """Same math as the kernel in plain JAX (for correctness validation)."""
    w_blob, b_blob = params["w_blob"], params["b_blob"]
    d = w_blob.shape[1]
    n_layers = w_blob.shape[0] // d
    x = jnp.concatenate([token, feature, embedding], axis=-1).astype(jnp.float32)
    x = jnp.pad(x, ((0, 0), (0, d - x.shape[1])))
    for i in range(n_layers):
        w = w_blob[d * i: d * (i + 1), :]
        b = b_blob[SUBLANE_F32 * i: SUBLANE_F32 * i + 1, :]
        y = jnp.dot(x.astype(jnp.bfloat16), w,
                    preferred_element_type=jnp.float32) + b
        x = jnp.maximum(y, 0.0) if i < n_layers - 1 else y
    return x[:, :4]


# ------------------------------------ main ------------------------------------

if __name__ == "__main__":
    # Small shapes consistent with the module.  Callers can raise batch to
    # ~128 (v5e) / ~256 (v6e/v7x) per call at essentially flat latency.
    batch = 8
    num_tokens = 8
    num_features = 16
    emb_size = 32
    layers = [64, 32]   # layers[0] must be even (split into two halves)

    root = jax.random.PRNGKey(0)
    k_params, k_tok, k_feat, k_emb = jax.random.split(root, 4)

    params = init_bert_mlp_params(k_params, num_tokens, num_features,
                                  emb_size, layers)

    token = jax.random.normal(k_tok, (batch, num_tokens), jnp.float32)
    feature = jax.random.normal(k_feat, (batch, num_features), jnp.float32)
    # Synthetic stand-in for BERT [CLS] embedding h_last[:, 0, :].
    embedding = jax.random.normal(k_emb, (batch, emb_size), jnp.float32)

    fwd = jax.jit(bert_mlp_forward)
    logits = fwd(params, token, feature, embedding)
    jax.block_until_ready(logits)

    assert logits.shape == (batch, 4), logits.shape
    assert bool(jnp.isfinite(logits).all())

    # Validate the kernel against the same math in plain JAX (generous
    # tolerance only for MXU vs. XLA accumulation-order differences).
    ref = _reference_forward(params, token, feature, embedding)
    assert bool(jnp.allclose(logits, ref, rtol=1e-2, atol=1e-2)), (
        float(jnp.max(jnp.abs(logits - ref))))

    print("KERNEL_OK")
</pallas_src>

<mosaic_0001>
module attributes {stable_mosaic.version = 11 : i64} {
  func.func @_fused_mlp_kernel(%arg0: memref<8x128xf32, #tpu.memory_space<vmem>>, %arg1: memref<384x128xbf16, #tpu.memory_space<vmem>>, %arg2: memref<24x128xf32, #tpu.memory_space<vmem>>, %arg3: memref<8x128xf32, #tpu.memory_space<vmem>>) attributes {dimension_semantics = [], scalar_prefetch = 0 : i64, scratch_operands = 0 : i64, tpu.core_type = #tpu.core_type<tc>} {
    %c0 = arith.constant 0 : index
    %c0_0 = arith.constant 0 : index
    %0 = vector.load %arg0[%c0, %c0_0] : memref<8x128xf32, #tpu.memory_space<vmem>>, vector<8x128xf32>
    %1 = arith.truncf %0 : vector<8x128xf32> to vector<8x128xbf16>
    %c0_1 = arith.constant 0 : index
    %c0_2 = arith.constant 0 : index
    %2 = vector.load %arg1[%c0_1, %c0_2] : memref<384x128xbf16, #tpu.memory_space<vmem>>, vector<128x128xbf16>
    %c0_3 = arith.constant 0 : index
    %c0_4 = arith.constant 0 : index
    %3 = vector.load %arg2[%c0_3, %c0_4] : memref<24x128xf32, #tpu.memory_space<vmem>>, vector<1x128xf32>
    %cst = arith.constant dense<0.000000e+00> : vector<8x128xf32>
    %4 = tpu.matmul %1, %2, %cst {dimension_numbers = #tpu.dot_dimension_numbers<[1], [0], [0], [1], [0, 0, 1, 1], [], []>} : vector<8x128xbf16>, vector<128x128xbf16>, vector<8x128xf32> -> vector<8x128xf32>
    %5 = vector.broadcast %3 : vector<1x128xf32> to vector<8x128xf32>
    %6 = arith.addf %4, %5 : vector<8x128xf32>
    %cst_5 = arith.constant 0.000000e+00 : f32
    %7 = vector.broadcast %cst_5 : f32 to vector<8x128xf32>
    %8 = arith.maximumf %6, %7 : vector<8x128xf32>
    %9 = arith.truncf %8 : vector<8x128xf32> to vector<8x128xbf16>
    %c128 = arith.constant 128 : index
    %c0_6 = arith.constant 0 : index
    %10 = vector.load %arg1[%c128, %c0_6] : memref<384x128xbf16, #tpu.memory_space<vmem>>, vector<128x128xbf16>
    %c8 = arith.constant 8 : index
    %c0_7 = arith.constant 0 : index
    %11 = vector.load %arg2[%c8, %c0_7] : memref<24x128xf32, #tpu.memory_space<vmem>>, vector<1x128xf32>
    %cst_8 = arith.constant dense<0.000000e+00> : vector<8x128xf32>
    %12 = tpu.matmul %9, %10, %cst_8 {dimension_numbers = #tpu.dot_dimension_numbers<[1], [0], [0], [1], [0, 0, 1, 1], [], []>} : vector<8x128xbf16>, vector<128x128xbf16>, vector<8x128xf32> -> vector<8x128xf32>
    %13 = vector.broadcast %11 : vector<1x128xf32> to vector<8x128xf32>
    %14 = arith.addf %12, %13 : vector<8x128xf32>
    %cst_9 = arith.constant 0.000000e+00 : f32
    %15 = vector.broadcast %cst_9 : f32 to vector<8x128xf32>
    %16 = arith.maximumf %14, %15 : vector<8x128xf32>
    %17 = arith.truncf %16 : vector<8x128xf32> to vector<8x128xbf16>
    %c256 = arith.constant 256 : index
    %c0_10 = arith.constant 0 : index
    %18 = vector.load %arg1[%c256, %c0_10] : memref<384x128xbf16, #tpu.memory_space<vmem>>, vector<128x128xbf16>
    %c16 = arith.constant 16 : index
    %c0_11 = arith.constant 0 : index
    %19 = vector.load %arg2[%c16, %c0_11] : memref<24x128xf32, #tpu.memory_space<vmem>>, vector<1x128xf32>
    %cst_12 = arith.constant dense<0.000000e+00> : vector<8x128xf32>
    %20 = tpu.matmul %17, %18, %cst_12 {dimension_numbers = #tpu.dot_dimension_numbers<[1], [0], [0], [1], [0, 0, 1, 1], [], []>} : vector<8x128xbf16>, vector<128x128xbf16>, vector<8x128xf32> -> vector<8x128xf32>
    %21 = vector.broadcast %19 : vector<1x128xf32> to vector<8x128xf32>
    %22 = arith.addf %20, %21 : vector<8x128xf32>
    %c0_13 = arith.constant 0 : index
    %c0_14 = arith.constant 0 : index
    %23 = vector.load %arg3[%c0_13, %c0_14] : memref<8x128xf32, #tpu.memory_space<vmem>>, vector<8x128xf32>
    tpu.vector_store %arg3[%c0_13, %c0_14], %22 {strides = array<i32>} : memref<8x128xf32, #tpu.memory_space<vmem>>, vector<8x128xf32>,
    return
  }
}

</mosaic_0001>

<bundles_post_ra>
// kernel: bert_mlp_forward.1
= control target key start
LH: loop header
LB: loop body
LE: loop exit
PB: predicated region body
PF: predicated region fallthrough
CT: control target
= control target key end

     0   :  { %8 = vsyncpa [#allocation3], 0  ;;  %s431_s15 = smov [#allocation2]   ;;  %s432_s17 = smov 64   ;;  %s472_s0 = inlined_call_operand.vmem [shape: f32[8,128], index: 0, kind: input, shape index: {}]   ;;  %s473_s1 = inlined_call_operand.hbm [shape: bf16[384,128], index: 1, kind: input, shape index: {}]   ;;  %s474_s2 = inlined_call_operand.vmem [shape: f32[24,128], index: 2, kind: input, shape index: {}]   ;;  %s475_s3 = inlined_call_operand.vmem [shape: f32[8,128], index: 3, kind: output, shape index: {}]  }
   0x1   :  { %s15_s14 = sshll.u32 %s473_s1, 4  ;;  %s17_s16 = sshll.u32 %s431_s15, 4  ;;  %s16_s14 = int_to_ptr.hbm [resolvable:$true] %s15_s14  ;;  %s18_s16 = int_to_ptr.vmem [resolvable:$true] %s17_s16 }
   0x2   :  { %s433_s18 = smov 4  }
   0x3   :  { %23 = dma.hbm_to_vmem [thread:$0]  %s16_s14, 3072, %s18_s16, [#allocation3], %s432_s17, %s432_s17, %s433_s18  }
   0x4   :  { %429 = dma.done.wait [#allocation3], 3072  }
   0x5   :  { %430 = vsyncadd [#allocation3], 4294964224  ;;  %v382_v0 = vld [vmem:[#allocation2 + $0x38] sm:$0xff]  ;;  %v381_v1 = vld [vmem:[#allocation2 + $0x30] sm:$0xff] }
   0x6   :  { %98 = vmatpush.bf16.msra.mxu0 %v382_v0  ;;  %v390_v2 = vld [vmem:[#allocation2 + $0x78] sm:$0xff]  ;;  %v389_v3 = vld [vmem:[#allocation2 + $0x70] sm:$0xff]  ;;  %v380_v4 = vld [vmem:[#allocation2 + $0x28] sm:$0xff] }
   0x7   :  { %179 = vmatpush.bf16.msra.mxu1 %v390_v2  ;;  %v388_v5 = vld [vmem:[#allocation2 + $0x68] sm:$0xff]  ;;  %v379_v6 = vld [vmem:[#allocation2 + $0x20] sm:$0xff]  ;;  %v378_v8 = vld [vmem:[#allocation2 + $0x18] sm:$0xff] }
   0x8   :  { %v387_v7 = vld [vmem:[#allocation2 + $0x60] sm:$0xff]  ;;  %v386_v9 = vld [vmem:[#allocation2 + $0x58] sm:$0xff]  ;;  %v377_v10 = vld [vmem:[#allocation2 + $0x10] sm:$0xff] }
   0x9   :  { %v385_v11 = vld [vmem:[#allocation2 + $0x50] sm:$0xff]  ;;  %v376_v12 = vld [vmem:[#allocation2 + $0x8] sm:$0xff]  ;;  %v375_v13 = vld [vmem:[#allocation2] sm:$0xff] }
   0xa   :  { %99 = vmatpush.bf16.msra.mxu0 %v381_v1  ;;  %v30_v14 = vld [vmem:[%s472_s0] sm:$0xff]  ;;  %v384_v16 = vld [vmem:[#allocation2 + $0x48] sm:$0xff]  ;;  %v398_v18 = vld [vmem:[#allocation2 + $0xb8] sm:$0xff] }
   0xb   :  { %180 = vmatpush.bf16.msra.mxu1 %v389_v3  ;;  %v31_v15 = vpack.c.bf16 %v30_v14, %v30_v14  ;;  %v383_v17 = vld [vmem:[#allocation2 + $0x40] sm:$0xff]  ;;  %260 = vmatpush.bf16.msra.mxu2 %v398_v18  ;;  %v397_v19 = vld [vmem:[#allocation2 + $0xb0] sm:$0xff]  ;;  %v396_v20 = vld [vmem:[#allocation2 + $0xa8] sm:$0xff] }
   0xc   :  { %v395_v21 = vld [vmem:[#allocation2 + $0xa0] sm:$0xff]  ;;  %v394_v22 = vld [vmem:[#allocation2 + $0x98] sm:$0xff]  ;;  %v393_v23 = vld [vmem:[#allocation2 + $0x90] sm:$0xff] }
   0xd   :  { %v402_v24 = vld [vmem:[%s474_s2] ss:$0 sm:$0xff]  ;;  %v392_v30 = vld [vmem:[#allocation2 + $0x88] sm:$0xff]  ;;  %v404_v38 = vld [vmem:[%s474_s2 + $0x10] ss:$0 sm:$0xff] }
   0xe   :  { %100 = vmatpush.bf16.msra.mxu0 %v380_v4  ;;  %v391_v31 = vld [vmem:[#allocation2 + $0x80] sm:$0xff]  ;;  %v403_v32 = vld [vmem:[%s474_s2 + $0x8] ss:$0 sm:$0xff] }
   0xf   :  { %181 = vmatpush.bf16.msra.mxu1 %v388_v5  ;;  %261 = vmatpush.bf16.msra.mxu2 %v397_v19 }
  0x12   :  { %101 = vmatpush.bf16.msra.mxu0 %v379_v6 }
  0x13   :  { %182 = vmatpush.bf16.msra.mxu1 %v387_v7  ;;  %262 = vmatpush.bf16.msra.mxu2 %v396_v20 }
  0x16   :  { %102 = vmatpush.bf16.msra.mxu0 %v378_v8 }
  0x17   :  { %183 = vmatpush.bf16.msra.mxu1 %v386_v9  ;;  %263 = vmatpush.bf16.msra.mxu2 %v395_v21 }
  0x1a   :  { %103 = vmatpush.bf16.msra.mxu0 %v377_v10 }
  0x1b   :  { %184 = vmatpush.bf16.msra.mxu1 %v385_v11  ;;  %264 = vmatpush.bf16.msra.mxu2 %v394_v22 }
  0x1e   :  { %104 = vmatpush.bf16.msra.mxu0 %v376_v12 }
  0x1f   :  { %185 = vmatpush.bf16.msra.mxu1 %v384_v16  ;;  %265 = vmatpush.bf16.msra.mxu2 %v393_v23 }
  0x22   :  { %105 = vmatpush.bf16.msra.mxu0 %v375_v13 }
  0x23   :  { %186 = vmatpush.bf16.msra.mxu1 %v383_v17  ;;  %266 = vmatpush.bf16.msra.mxu2 %v392_v30 }
  0x25   :  { %106 = vmatmul.bf16.vlgmr.msra.gmra.mxu0 %v31_v15 }
  0x27   :  { %267 = vmatpush.bf16.msra.mxu2 %v391_v31 }
  0xa2   :  { %v107_v25 = vpop.f32.mrf.mxu0 }
  0xa3   :  { %v108_v26 = vadd.f32 %v402_v24, %v107_v25 }
  0xa5   :  { %v111_v27 = vmax.f32 %v108_v26, 0.0 }
  0xa7   :  { %v112_v28 = vpack.c.bf16 %v111_v27, %v111_v27 }
  0xa9   :  { %187 = vmatmul.bf16.vlgmr.msra.gmra.mxu1 %v112_v28 }
  0xaa   :  { %v109_v29 = vpop.f32.mrf.mxu0 }
 0x126   :  { %v188_v33 = vpop.f32.mrf.mxu1 }
 0x127   :  { %v189_v34 = vadd.f32 %v403_v32, %v188_v33 }
 0x129   :  { %v192_v35 = vmax.f32 %v189_v34, 0.0 }
 0x12b   :  { %v193_v36 = vpack.c.bf16 %v192_v35, %v192_v35 }
 0x12d   :  { %268 = vmatmul.bf16.vlgmr.msra.gmra.mxu2 %v193_v36 }
 0x12e   :  { %v190_v37 = vpop.f32.mrf.mxu1 }
 0x1b0   :  { %v269_v39 = vpop.f32.mrf.mxu2 }
 0x1b1   :  { %v270_v40 = vadd.f32 %v404_v38, %v269_v39 }
 0x1b3   :  { %273 = vst [vmem:[%s475_s3] sm:$0xff] %v270_v40 }
 0x1b8   :  { %v271_v41 = vpop.f32.mrf.mxu2 }
 0x1b9   :  { %278 = vsyncpa [#allocation3], 1 }

</bundles_post_ra>
